<compile_context>
chip_gen: v7x
topology: tpu7x:2x2x1
jax: 0.10.0
libtpu: 0.0.40
codegen_flags: <defaults>
</compile_context>

<pallas_src>
import functools
import math

import jax
import jax.numpy as jnp
from jax.experimental import pallas as pl
from jax.experimental.pallas import tpu as pltpu


def _round_up(x, m):
    return (x + m - 1) // m * m


def _dual_head_mlp_kernel(n_shared, out_dim, *refs):
    # refs layout:
    #   [x,                                        (f32, cast to bf16 in-kernel)
    #    w0, b0, ..., w_{n-1}, b_{n-1},            (trunk: bf16 W / f32 (1,n) b)
    #    w_head, b_head,                           (transposed fused head)
    #    clamp,                                    (SMEM: [max_logstd, e^max, e^min])
    #    out]                                      (f32, (rows, tile_b))
    idx = 0
    x_ref = refs[idx]; idx += 1
    shared = []
    for _ in range(n_shared):
        shared.append((refs[idx], refs[idx + 1]))
        idx += 2
    wh_ref, bh_ref = refs[idx], refs[idx + 1]; idx += 2
    clamp_ref = refs[idx]; idx += 1
    out_ref = refs[idx]

    # Shared trunk: Linear + ReLU per hidden layer (static Python loop,
    # unrolled at trace time).  bf16 activations feed the MXU, f32 accumulate.
    h = x_ref[...].astype(jnp.bfloat16)          # in-kernel cast (free under DMA)
    for w_ref, b_ref in shared:
        acc = jnp.dot(h, w_ref[...], preferred_element_type=jnp.float32)
        h = jnp.maximum(acc + b_ref[...], 0.0).astype(jnp.bfloat16)

    # Fused heads, transposed: (rows, hidden) x (tile_b, hidden) -> (rows, tile_b).
    # Batch maps to lanes -> full 128-lane stores, tiny writeback.
    slab = jax.lax.dot_general(
        wh_ref[...], h,
        dimension_numbers=(((1,), (1,)), ((), ())),
        preferred_element_type=jnp.float32) + bh_ref[...]

    # Exact rewrite of the double-softplus clamp + exp:
    #   std = exp(min) + exp(max) * sigmoid(z - max)
    max_ls = clamp_ref[0]
    e_max = clamp_ref[1]
    e_min = clamp_ref[2]
    std = e_min + e_max / (1.0 + jnp.exp(max_ls - slab))

    # Rows [0, out_dim) = mean (raw), rows [out_dim, 2*out_dim) = std,
    # remaining rows are padding and get discarded by the wrapper.
    row = jax.lax.broadcasted_iota(jnp.int32, slab.shape, 0)
    out_ref[...] = jnp.where(row >= out_dim, std, slab).astype(out_ref.dtype)


def pack_dual_head_params(shared_ws, shared_bs, w_mean, b_mean,
                          w_logstd, b_logstd, max_logstd, min_logstd):
    """One-time, call-invariant parameter packing (hoisted out of the hot path).

    shared_ws[i]: (in_i, hidden_i) f32, shared_bs[i]: (hidden_i,) f32
    w_mean / w_logstd: (hidden_last, output_dim), b_*: (output_dim,)
    max_logstd / min_logstd: (1, 1)
    """
    hidden_last, out_dim = w_mean.shape
    rows = max(8, _round_up(2 * out_dim, 8))

    # Transposed fused head weight (rows, hidden_last):
    #   rows [0, out_dim)           -> mean head
    #   rows [out_dim, 2*out_dim)   -> logstd head
    wh = jnp.zeros((rows, hidden_last), jnp.float32)
    wh = wh.at[:out_dim, :].set(w_mean.T.astype(jnp.float32))
    wh = wh.at[out_dim:2 * out_dim, :].set(w_logstd.T.astype(jnp.float32))
    bh = jnp.zeros((rows, 1), jnp.float32)
    bh = bh.at[:out_dim, 0].set(b_mean.astype(jnp.float32))
    bh = bh.at[out_dim:2 * out_dim, 0].set(b_logstd.astype(jnp.float32))

    # Module defines the clamps as (1, 1) parameters -> true scalars.
    max_ls = jnp.reshape(max_logstd, (-1,))[0].astype(jnp.float32)
    min_ls = jnp.reshape(min_logstd, (-1,))[0].astype(jnp.float32)
    clamp = jnp.stack([max_ls, jnp.exp(max_ls), jnp.exp(min_ls)])  # (3,) SMEM

    return {
        "ws": tuple(w.astype(jnp.bfloat16) for w in shared_ws),
        "bs": tuple(b.reshape(1, -1).astype(jnp.float32) for b in shared_bs),
        "wh": wh.astype(jnp.bfloat16),
        "bh": bh,
        "clamp": clamp,
    }


def dual_head_mlp(x, params, *, out_dim, tile_b_max=1024):
    """Pallas implementation of DualHeadMLP.forward.

    x: [B, ...] (any trailing shape, flattened like PyTorch's reshape), f32.
    params: output of pack_dual_head_params().
    Returns (mean, std), each [B, out_dim] float32.
    """
    B = x.shape[0]
    x_flat = x.reshape(B, -1)                      # stays f32; kernel casts
    d_in = x_flat.shape[1]
    rows = params["wh"].shape[0]

    # Batch tiling: one full-extent block if B fits (always legal, any B);
    # otherwise 128-divisible tiles with an even number of grid steps so the
    # "parallel" batch axis shards evenly across v7x's two TensorCores.
    if B <= tile_b_max:
        tile_b = B
    else:
        n_steps = pl.cdiv(B, tile_b_max)
        if n_steps % 2:
            n_steps += 1
        tile_b = min(tile_b_max, _round_up(pl.cdiv(B, n_steps), 128))
    grid = (pl.cdiv(B, tile_b),)

    args = [x_flat]
    in_specs = [pl.BlockSpec((tile_b, d_in), lambda i: (i, 0))]
    for w, b in zip(params["ws"], params["bs"]):
        args += [w, b]
        in_specs += [
            pl.BlockSpec(w.shape, lambda i: (0, 0)),   # weights stay resident
            pl.BlockSpec(b.shape, lambda i: (0, 0)),
        ]
    args += [params["wh"], params["bh"], params["clamp"]]
    in_specs += [
        pl.BlockSpec(params["wh"].shape, lambda i: (0, 0)),
        pl.BlockSpec(params["bh"].shape, lambda i: (0, 0)),
        pl.BlockSpec(memory_space=pltpu.MemorySpace.SMEM),
    ]

    # Advisory cost estimate so XLA can schedule around this mem-bound call.
    flops = 2 * B * rows * params["wh"].shape[1]
    for w in params["ws"]:
        flops += 2 * B * w.shape[0] * w.shape[1]
    bytes_accessed = (x_flat.size * 4 + rows * B * 4
                      + sum(int(w.size) * 2 for w in params["ws"])
                      + sum(int(b.size) * 4 for b in params["bs"])
                      + int(params["wh"].size) * 2 + int(params["bh"].size) * 4)
    cost = pl.CostEstimate(flops=int(flops), transcendentals=int(B * rows),
                           bytes_accessed=int(bytes_accessed))

    kernel = functools.partial(_dual_head_mlp_kernel, len(params["ws"]), out_dim)

    slab = pl.pallas_call(
        kernel,
        grid=grid,
        out_shape=jax.ShapeDtypeStruct((rows, B), jnp.float32),
        in_specs=in_specs,
        out_specs=pl.BlockSpec((rows, tile_b), lambda i: (0, i)),
        compiler_params=pltpu.CompilerParams(
            dimension_semantics=("parallel",)),
        cost_estimate=cost,
    )(*args)

    mean = slab[:out_dim, :].T                     # (B, out_dim)
    std = slab[out_dim:2 * out_dim, :].T           # (B, out_dim)
    return mean, std


def _kaiming_uniform_linear(key, fan_in, fan_out):
    # PyTorch kaiming_uniform_(mode='fan_in', nonlinearity='linear'):
    # gain = 1, bound = sqrt(3 / fan_in). Stored as (in, out) = weight.T.
    bound = math.sqrt(3.0 / fan_in)
    return jax.random.uniform(key, (fan_in, fan_out), jnp.float32, -bound, bound)


def _reference(x, shared_ws, shared_bs, w_mean, b_mean, w_logstd, b_logstd,
               max_logstd, min_logstd):
    h = x.reshape(x.shape[0], -1)
    for w, b in zip(shared_ws, shared_bs):
        h = jax.nn.relu(h @ w + b)
    mean = h @ w_mean + b_mean
    logstd = h @ w_logstd + b_logstd
    logstd = max_logstd - jax.nn.softplus(max_logstd - logstd)
    logstd = min_logstd + jax.nn.softplus(logstd - min_logstd)
    return mean, jnp.exp(logstd)


if __name__ == "__main__":
    # Module config: hidden_dim=(64, 32), input_dim=4*16*16=1024, output_dim=1,
    # activation=ReLU, initial_max_std=0.2, initial_min_std=0.1.
    B, C, H, W = 2, 4, 16, 16
    input_dim = C * H * W
    hidden_dim = (64, 32)
    output_dim = 1

    key = jax.random.PRNGKey(0)
    keys = jax.random.split(key, 8)

    x = jax.random.normal(keys[0], (B, C, H, W), jnp.float32)

    shared_ws, shared_bs = [], []
    in_d = input_dim
    for i, h_d in enumerate(hidden_dim):
        shared_ws.append(_kaiming_uniform_linear(keys[1 + i], in_d, h_d))
        shared_bs.append(jnp.zeros((h_d,), jnp.float32))
        in_d = h_d

    w_mean = _kaiming_uniform_linear(keys[4], hidden_dim[-1], output_dim)
    b_mean = jnp.zeros((output_dim,), jnp.float32)
    w_logstd = _kaiming_uniform_linear(keys[5], hidden_dim[-1], output_dim)
    b_logstd = jnp.zeros((output_dim,), jnp.float32)

    max_logstd = jnp.full((1, 1), math.log(0.2), jnp.float32)
    min_logstd = jnp.full((1, 1), math.log(0.1), jnp.float32)

    # One-time parameter packing (outside the hot path), then a jitted forward.
    packed = pack_dual_head_params(shared_ws, shared_bs, w_mean, b_mean,
                                   w_logstd, b_logstd, max_logstd, min_logstd)
    packed = jax.tree_util.tree_map(jax.block_until_ready, packed)

    fwd = jax.jit(functools.partial(dual_head_mlp, out_dim=output_dim))
    mean, std = fwd(x, packed)
    jax.block_until_ready((mean, std))

    ref_mean, ref_std = _reference(x, shared_ws, shared_bs, w_mean, b_mean,
                                   w_logstd, b_logstd, max_logstd, min_logstd)
    assert mean.shape == (B, output_dim) and std.shape == (B, output_dim)
    # Tolerances relaxed vs pure-f32 because activations/weights stream through
    # the MXU as bf16 (f32 accumulation); expected relative error ~1e-2.
    assert jnp.allclose(mean, ref_mean, atol=5e-2, rtol=5e-2)
    assert jnp.allclose(std, ref_std, atol=5e-2, rtol=5e-2)

    print("KERNEL_OK")
</pallas_src>

<mosaic_0001>
module attributes {stable_mosaic.version = 11 : i64} {
  func.func @_dual_head_mlp_kernel(%arg0: i32, %arg1: memref<2x1024xf32, #tpu.memory_space<vmem>>, %arg2: memref<1024x64xbf16, #tpu.memory_space<vmem>>, %arg3: memref<1x64xf32, #tpu.memory_space<vmem>>, %arg4: memref<64x32xbf16, #tpu.memory_space<vmem>>, %arg5: memref<1x32xf32, #tpu.memory_space<vmem>>, %arg6: memref<8x32xbf16, #tpu.memory_space<vmem>>, %arg7: memref<8x1xf32, #tpu.memory_space<vmem>>, %arg8: memref<3xf32, #tpu.memory_space<smem>>, %arg9: memref<8x2xf32, #tpu.memory_space<vmem>>) attributes {dimension_semantics = [#tpu.dimension_semantics<parallel>], iteration_bounds = array<i64: 1>, scalar_prefetch = 0 : i64, scratch_operands = 0 : i64, tpu.core_type = #tpu.core_type<tc>, window_params = [{transform_indices = @transform_0, window_bounds = array<i64: 2, 1024>}, {pipeline_mode = #tpu.pipeline_mode<synchronous>, transform_indices = @transform_1, window_bounds = array<i64: 1024, 64>}, {pipeline_mode = #tpu.pipeline_mode<synchronous>, transform_indices = @transform_2, window_bounds = array<i64: 1, 64>}, {pipeline_mode = #tpu.pipeline_mode<synchronous>, transform_indices = @transform_3, window_bounds = array<i64: 64, 32>}, {pipeline_mode = #tpu.pipeline_mode<synchronous>, transform_indices = @transform_4, window_bounds = array<i64: 1, 32>}, {pipeline_mode = #tpu.pipeline_mode<synchronous>, transform_indices = @transform_5, window_bounds = array<i64: 8, 32>}, {pipeline_mode = #tpu.pipeline_mode<synchronous>, transform_indices = @transform_6, window_bounds = array<i64: 8, 1>}, {transform_indices = @transform_7, window_bounds = array<i64: 3>}, {transform_indices = @transform_8, window_bounds = array<i64: 8, 2>}]} {
    %c0 = arith.constant 0 : index
    %c0_0 = arith.constant 0 : index
    %0 = vector.load %arg1[%c0, %c0_0] : memref<2x1024xf32, #tpu.memory_space<vmem>>, vector<2x1024xf32>
    %1 = arith.truncf %0 : vector<2x1024xf32> to vector<2x1024xbf16>
    %c0_1 = arith.constant 0 : index
    %c0_2 = arith.constant 0 : index
    %2 = vector.load %arg2[%c0_1, %c0_2] : memref<1024x64xbf16, #tpu.memory_space<vmem>>, vector<1024x64xbf16>
    %cst = arith.constant dense<0.000000e+00> : vector<2x64xf32>
    %3 = tpu.matmul %1, %2, %cst {dimension_numbers = #tpu.dot_dimension_numbers<[1], [0], [0], [1], [0, 0, 1, 1], [], []>} : vector<2x1024xbf16>, vector<1024x64xbf16>, vector<2x64xf32> -> vector<2x64xf32>
    %c0_3 = arith.constant 0 : index
    %c0_4 = arith.constant 0 : index
    %4 = vector.load %arg3[%c0_3, %c0_4] : memref<1x64xf32, #tpu.memory_space<vmem>>, vector<1x64xf32>
    %5 = vector.broadcast %4 : vector<1x64xf32> to vector<2x64xf32>
    %6 = arith.addf %3, %5 : vector<2x64xf32>
    %cst_5 = arith.constant 0.000000e+00 : f32
    %7 = vector.broadcast %cst_5 : f32 to vector<2x64xf32>
    %8 = arith.maximumf %6, %7 : vector<2x64xf32>
    %9 = arith.truncf %8 : vector<2x64xf32> to vector<2x64xbf16>
    %c0_6 = arith.constant 0 : index
    %c0_7 = arith.constant 0 : index
    %10 = vector.load %arg4[%c0_6, %c0_7] : memref<64x32xbf16, #tpu.memory_space<vmem>>, vector<64x32xbf16>
    %cst_8 = arith.constant dense<0.000000e+00> : vector<2x32xf32>
    %11 = tpu.matmul %9, %10, %cst_8 {dimension_numbers = #tpu.dot_dimension_numbers<[1], [0], [0], [1], [0, 0, 1, 1], [], []>} : vector<2x64xbf16>, vector<64x32xbf16>, vector<2x32xf32> -> vector<2x32xf32>
    %c0_9 = arith.constant 0 : index
    %c0_10 = arith.constant 0 : index
    %12 = vector.load %arg5[%c0_9, %c0_10] : memref<1x32xf32, #tpu.memory_space<vmem>>, vector<1x32xf32>
    %13 = vector.broadcast %12 : vector<1x32xf32> to vector<2x32xf32>
    %14 = arith.addf %11, %13 : vector<2x32xf32>
    %cst_11 = arith.constant 0.000000e+00 : f32
    %15 = vector.broadcast %cst_11 : f32 to vector<2x32xf32>
    %16 = arith.maximumf %14, %15 : vector<2x32xf32>
    %17 = arith.truncf %16 : vector<2x32xf32> to vector<2x32xbf16>
    %c0_12 = arith.constant 0 : index
    %c0_13 = arith.constant 0 : index
    %18 = vector.load %arg6[%c0_12, %c0_13] : memref<8x32xbf16, #tpu.memory_space<vmem>>, vector<8x32xbf16>
    %cst_14 = arith.constant dense<0.000000e+00> : vector<8x2xf32>
    %19 = tpu.matmul %18, %17, %cst_14 {dimension_numbers = #tpu.dot_dimension_numbers<[1], [1], [0], [0], [0, 0, 1, 0], [], []>} : vector<8x32xbf16>, vector<2x32xbf16>, vector<8x2xf32> -> vector<8x2xf32>
    %c0_15 = arith.constant 0 : index
    %c0_16 = arith.constant 0 : index
    %20 = vector.load %arg7[%c0_15, %c0_16] : memref<8x1xf32, #tpu.memory_space<vmem>>, vector<8x1xf32>
    %21 = vector.broadcast %20 : vector<8x1xf32> to vector<8x2xf32>
    %22 = arith.addf %19, %21 : vector<8x2xf32>
    %c0_17 = arith.constant 0 : index
    %23 = memref.load %arg8[%c0_17] : memref<3xf32, #tpu.memory_space<smem>>
    %c1 = arith.constant 1 : index
    %24 = memref.load %arg8[%c1] : memref<3xf32, #tpu.memory_space<smem>>
    %c2 = arith.constant 2 : index
    %25 = memref.load %arg8[%c2] : memref<3xf32, #tpu.memory_space<smem>>
    %26 = vector.broadcast %23 : f32 to vector<8x2xf32>
    %27 = arith.subf %26, %22 : vector<8x2xf32>
    %28 = math.exp %27 : vector<8x2xf32>
    %cst_18 = arith.constant 1.000000e+00 : f32
    %29 = vector.broadcast %cst_18 : f32 to vector<8x2xf32>
    %30 = arith.addf %29, %28 : vector<8x2xf32>
    %31 = vector.broadcast %24 : f32 to vector<8x2xf32>
    %32 = arith.divf %31, %30 : vector<8x2xf32>
    %33 = vector.broadcast %25 : f32 to vector<8x2xf32>
    %34 = arith.addf %33, %32 : vector<8x2xf32>
    %35 = tpu.iota {dimensions = array<i32: 0>} : vector<8x2xi32>
    %c1_i32 = arith.constant 1 : i32
    %36 = vector.broadcast %c1_i32 : i32 to vector<8x2xi32>
    %37 = arith.cmpi sge, %35, %36 : vector<8x2xi32>
    %38 = arith.select %37, %34, %22 : vector<8x2xi1>, vector<8x2xf32>
    %c0_19 = arith.constant 0 : index
    %c0_20 = arith.constant 0 : index
    %39 = vector.load %arg9[%c0_19, %c0_20] : memref<8x2xf32, #tpu.memory_space<vmem>>, vector<8x2xf32>
    tpu.vector_store %arg9[%c0_19, %c0_20], %38 {strides = array<i32>} : memref<8x2xf32, #tpu.memory_space<vmem>>, vector<8x2xf32>,
    return
  }
  func.func @transform_0(%arg0: i32) -> (i32, i32) {
    %c0_i32 = arith.constant 0 : i32
    %c0_i32_0 = arith.constant 0 : i32
    return %arg0, %c0_i32 : i32, i32
  }
  func.func @transform_1(%arg0: i32) -> (i32, i32) {
    %c0_i32 = arith.constant 0 : i32
    %c0_i32_0 = arith.constant 0 : i32
    %c0_i32_1 = arith.constant 0 : i32
    return %c0_i32, %c0_i32_0 : i32, i32
  }
  func.func @transform_2(%arg0: i32) -> (i32, i32) {
    %c0_i32 = arith.constant 0 : i32
    %c0_i32_0 = arith.constant 0 : i32
    %c0_i32_1 = arith.constant 0 : i32
    return %c0_i32, %c0_i32_0 : i32, i32
  }
  func.func @transform_3(%arg0: i32) -> (i32, i32) {
    %c0_i32 = arith.constant 0 : i32
    %c0_i32_0 = arith.constant 0 : i32
    %c0_i32_1 = arith.constant 0 : i32
    return %c0_i32, %c0_i32_0 : i32, i32
  }
  func.func @transform_4(%arg0: i32) -> (i32, i32) {
    %c0_i32 = arith.constant 0 : i32
    %c0_i32_0 = arith.constant 0 : i32
    %c0_i32_1 = arith.constant 0 : i32
    return %c0_i32, %c0_i32_0 : i32, i32
  }
  func.func @transform_5(%arg0: i32) -> (i32, i32) {
    %c0_i32 = arith.constant 0 : i32
    %c0_i32_0 = arith.constant 0 : i32
    %c0_i32_1 = arith.constant 0 : i32
    return %c0_i32, %c0_i32_0 : i32, i32
  }
  func.func @transform_6(%arg0: i32) -> (i32, i32) {
    %c0_i32 = arith.constant 0 : i32
    %c0_i32_0 = arith.constant 0 : i32
    %c0_i32_1 = arith.constant 0 : i32
    return %c0_i32, %c0_i32_0 : i32, i32
  }
  func.func @transform_7(%arg0: i32) -> i32 {
    %c0_i32 = arith.constant 0 : i32
    %c0_i32_0 = arith.constant 0 : i32
    return %c0_i32 : i32
  }
  func.func @transform_8(%arg0: i32) -> (i32, i32) {
    %c0_i32 = arith.constant 0 : i32
    %c0_i32_0 = arith.constant 0 : i32
    return %c0_i32, %arg0 : i32, i32
  }
}

</mosaic_0001>

<bundles_post_ra>
// kernel: dual_head_mlp.1
= control target key start
LH: loop header
LB: loop body
LE: loop exit
PB: predicated region body
PF: predicated region fallthrough
CT: control target
= control target key end

     0   :  { %13 = vsyncpa [#allocation3], 0  ;;  %s1510_s0 = inlined_call_operand.vmem [shape: f32[2,1024], index: 0, kind: input, shape index: {}]   ;;  %s1511_s1 = inlined_call_operand.vmem [shape: bf16[1024,64], index: 1, kind: input, shape index: {}]   ;;  %s1512_s2 = inlined_call_operand.vmem [shape: f32[1,64], index: 2, kind: input, shape index: {}]   ;;  %s1513_s3 = inlined_call_operand.vmem [shape: bf16[64,32], index: 3, kind: input, shape index: {}]   ;;  %s1514_s4 = inlined_call_operand.vmem [shape: f32[1,32], index: 4, kind: input, shape index: {}]   ;;  %s1515_s5 = inlined_call_operand.vmem [shape: bf16[8,32], index: 5, kind: input, shape index: {}]   ;;  %s1516_s6 = inlined_call_operand.vmem [shape: f32[8,1], index: 6, kind: input, shape index: {}]   ;;  %s1517_s7 = inlined_call_operand.vmem [shape: f32[3], index: 7, kind: input, shape index: {}]   ;;  %s1518_s8 = inlined_call_operand.vmem [shape: f32[8,2], index: 8, kind: output, shape index: {}]  }
   0x1   :  { %s34_s29 = sshll.u32 %s1517_s7, 4  ;;  %s35_s29 = int_to_ptr.vmem [resolvable:$true] %s34_s29 }
   0x2   :  { %s1208_s30 = scalar_lea.vmem %s35_s29, 16  ;;  %p1213_p1 = scmp.lt.s32.totalorder %s35_s29, %s35_s29 }
   0x3   :  { %p1209_p0 = scmp.ne.s32.totalorder %s35_s29, %s1208_s30  ;;  %p1214_p2 = scmp.lt.s32.totalorder %s1208_s30, %s1208_s30 }
   0x5   :  { %p1215_p3 = por %p1214_p2, %p1213_p1 }
   0x7   :  { %p1216_p4 = pnand %p1215_p3, %p1209_p0 }
   0x9   :  { %1219 = shalt.err (!%p1216_p4)
}
   0xa   :  { %s1222_s9 = smov [#allocation2]  }
   0xb   :  { %37 = dma.vmem_to_smem %s35_s29, 16, %s1222_s9, [#allocation3]  }
   0xc   :  { %1220 = dma.done.wait [#allocation3], 16  }
   0xd   :  { %1221 = vsyncadd [#allocation3], 4294967280 }
   0xe   :  { %41 = sfence }
   0xf   :  { %v1134_v0 = vld [vmem:[%s1511_s1 + $0x40] sm:$0xff]   ;;  %v1138_v4 = vld [vmem:[%s1511_s1 + $0x48] sm:$0xff]   ;;  %v1142_v8 = vld [vmem:[%s1511_s1 + $0x50] sm:$0xff]   ;;  %v51_v28 = vlaneseq  ;;  %v1223_v36 = vmov 1983009808   ;;  %vm1225_vm0 = vmmov 0  }
  0x10   :  { %v1135_v1 = vld [vmem:[%s1511_s1 + $0xc0] sm:$0xff]   ;;  %1015 = vmatprep.subr.bf16.mxu0 %v1134_v0  ;;  %v1139_v5 = vld [vmem:[%s1511_s1 + $0xc8] sm:$0xff]   ;;  %v1143_v9 = vld [vmem:[%s1511_s1 + $0xd0] sm:$0xff]   ;;  %v49_v37 = vunpack.c.l.s4 %v1223_v36  ;;  %vm817_vm1 = vcmask 523264   ;;  %vm870_vm2 = vcmask 261120   ;;  %s1014_s15 = sld [smem:[#allocation2 + $0x2]] }
  0x11   :  { %v1136_v2 = vld [vmem:[%s1511_s1] sm:$0xff]   ;;  %1037 = vmatprep.subr.bf16.mxu1 %v1135_v1  ;;  %v1140_v6 = vld [vmem:[%s1511_s1 + $0x8] sm:$0xff]   ;;  %v1144_v10 = vld [vmem:[%s1511_s1 + $0x10] sm:$0xff]   ;;  %v1371_v33 = vshrl.u32 %v51_v28, 7  ;;  %vm934_vm4 = vcmask 15360  }
  0x12   :  { %v1137_v3 = vld [vmem:[%s1511_s1 + $0x80] sm:$0xff]   ;;  %1016 = vmatpush3.bf16.msra.mxu0 %v1136_v2  ;;  %v1141_v7 = vld [vmem:[%s1511_s1 + $0x88] sm:$0xff]   ;;  %v1145_v11 = vld [vmem:[%s1511_s1 + $0x90] sm:$0xff]   ;;  %v50_v39 = vunpack.c.0.s8 %v49_v37 }
  0x13   :  { %1038 = vmatpush3.bf16.msra.mxu1 %v1137_v3  ;;  %1017 = vmatprep.subr.bf16.mxu0 %v1138_v4  ;;  %v1146_v12 = vld [vmem:[%s1511_s1 + $0x58] sm:$0xff]   ;;  %v1150_v16 = vld [vmem:[%s1511_s1 + $0x60] sm:$0xff]   ;;  %v1154_v20 = vld [vmem:[%s1511_s1 + $0x68] sm:$0xff]   ;;  %vm932_vm3 = vcmp.ge.s32.totalorder %v1371_v33, 1 }
  0x14   :  { %1039 = vmatprep.subr.bf16.mxu1 %v1139_v5  ;;  %v1147_v13 = vld [vmem:[%s1511_s1 + $0xd8] sm:$0xff]   ;;  %v1151_v17 = vld [vmem:[%s1511_s1 + $0xe0] sm:$0xff]   ;;  %v1155_v21 = vld [vmem:[%s1511_s1 + $0xe8] sm:$0xff]   ;;  %v1383_v41 = vsub.s32 %v50_v39, %v1371_v33 }
  0x15   :  { %v1148_v14 = vld [vmem:[%s1511_s1 + $0x18] sm:$0xff]   ;;  %v1152_v18 = vld [vmem:[%s1511_s1 + $0x20] sm:$0xff]   ;;  %v1156_v22 = vld [vmem:[%s1511_s1 + $0x28] sm:$0xff]  }
  0x16   :  { %1018 = vmatpush3.bf16.msra.mxu0 %v1140_v6  ;;  %v1149_v15 = vld [vmem:[%s1511_s1 + $0x98] sm:$0xff]   ;;  %v1153_v19 = vld [vmem:[%s1511_s1 + $0xa0] sm:$0xff]   ;;  %v1157_v23 = vld [vmem:[%s1511_s1 + $0xa8] sm:$0xff]  }
  0x17   :  { %1040 = vmatpush3.bf16.msra.mxu1 %v1141_v7  ;;  %1019 = vmatprep.subr.bf16.mxu0 %v1142_v8  ;;  %v1158_v24 = vld [vmem:[%s1511_s1 + $0x70] sm:$0xff]   ;;  %v1162_v29 = vld [vmem:[%s1511_s1 + $0x78] sm:$0xff]   ;;  %v43_v34 = vld [vmem:[%s1510_s0] sm:$0xff] }
  0x18   :  { %1041 = vmatprep.subr.bf16.mxu1 %v1143_v9  ;;  %v1159_v25 = vld [vmem:[%s1511_s1 + $0xf0] sm:$0xff]   ;;  %v1163_v30 = vld [vmem:[%s1511_s1 + $0xf8] sm:$0xff]   ;;  %v1167_v35 = vld [vmem:[%s1511_s1 + $0x140] sm:$0xff]   ;;  %v47_v40 = vcombine.high %v43_v34, %v43_v34  ;;  %v54_v42 = vrot.slane %v43_v34, %v1383_v41 }
  0x19   :  { %v1160_v26 = vld [vmem:[%s1511_s1 + $0x30] sm:$0xff]   ;;  %v1164_v31 = vld [vmem:[%s1511_s1 + $0x38] sm:$0xff]   ;;  %v1168_v38 = vld [vmem:[%s1511_s1 + $0x1c0] sm:$0xff]  }
  0x1a   :  { %1020 = vmatpush3.bf16.msra.mxu0 %v1144_v10  ;;  %v1161_v27 = vld [vmem:[%s1511_s1 + $0xb0] sm:$0xff]   ;;  %v1165_v32 = vld [vmem:[%s1511_s1 + $0xb8] sm:$0xff]   ;;  %v61_v43 = vrot.slane %v47_v40, %v1383_v41  ;;  %v62_v44 = vcombine.high %v54_v42, %v54_v42  ;;  %v1169_v46 = vld [vmem:[%s1511_s1 + $0x100] sm:$0xff]   ;;  %v89_v47 = vpack.c.bf16 %v54_v42, %v54_v42 }
  0x1b   :  { %1042 = vmatpush3.bf16.msra.mxu1 %v1145_v11  ;;  %1021 = vmatprep.subr.bf16.mxu0 %v1146_v12  ;;  %v1170_v49 = vld [vmem:[%s1511_s1 + $0x180] sm:$0xff]   ;;  %v1171_v52 = vld [vmem:[%s1511_s1 + $0x148] sm:$0xff]   ;;  %v1175_v56 = vld [vmem:[%s1511_s1 + $0x150] sm:$0xff]  }
  0x1c   :  { %1043 = vmatprep.subr.bf16.mxu1 %v1147_v13  ;;  %v63_v45 = vcombine.high %v61_v43, %v61_v43  ;;  %v91_v48 = vpack.c.bf16 %v61_v43, %v61_v43  ;;  %v90_v50 = vpack.c.bf16 %v62_v44, %v62_v44  ;;  %v1172_v53 = vld [vmem:[%s1511_s1 + $0x1c8] sm:$0xff]   ;;  %v1176_v57 = vld [vmem:[%s1511_s1 + $0x1d0] sm:$0xff]   ;;  %v1179_v60 = vld [vmem:[%s1511_s1 + $0x158] sm:$0xff]  }
  0x1d   :  { %v1173_v54 = vld [vmem:[%s1511_s1 + $0x108] sm:$0xff]   ;;  %v1177_v58 = vld [vmem:[%s1511_s1 + $0x110] sm:$0xff]   ;;  %v1180_v61 = vld [vmem:[%s1511_s1 + $0x1d8] sm:$0xff]  }
  0x1e   :  { %1022 = vmatpush3.bf16.msra.mxu0 %v1148_v14  ;;  %v92_v51 = vpack.c.bf16 %v63_v45, %v63_v45  ;;  %648 = vmatprep.mubr.bf16.mxu0 %v90_v50  ;;  %v1174_v55 = vld [vmem:[%s1511_s1 + $0x188] sm:$0xff]   ;;  %v1178_v59 = vld [vmem:[%s1511_s1 + $0x190] sm:$0xff]   ;;  %v1181_v62 = vld [vmem:[%s1511_s1 + $0x118] sm:$0xff]  }
  0x1f   :  { %1044 = vmatpush3.bf16.msra.mxu1 %v1149_v15  ;;  %1023 = vmatprep.subr.bf16.mxu0 %v1150_v16  ;;  %v1182_v63 = vld [vmem:[%s1511_s1 + $0x198] sm:$0xff]   ;;  %v1183_v0 = vld [vmem:[%s1511_s1 + $0x160] sm:$0xff]   ;;  %v1187_v4 = vld [vmem:[%s1511_s1 + $0x168] sm:$0xff]  }
  0x20   :  { %1045 = vmatprep.subr.bf16.mxu1 %v1151_v17  ;;  %688 = vmatprep.mubr.bf16.mxu1 %v92_v51  ;;  %v1184_v1 = vld [vmem:[%s1511_s1 + $0x1e0] sm:$0xff]   ;;  %v1188_v5 = vld [vmem:[%s1511_s1 + $0x1e8] sm:$0xff]   ;;  %v1191_v8 = vld [vmem:[%s1511_s1 + $0x170] sm:$0xff]  }
  0x21   :  { %v1185_v2 = vld [vmem:[%s1511_s1 + $0x120] sm:$0xff]   ;;  %v1189_v6 = vld [vmem:[%s1511_s1 + $0x128] sm:$0xff]   ;;  %v1192_v9 = vld [vmem:[%s1511_s1 + $0x1f0] sm:$0xff]  }
  0x22   :  { %1024 = vmatpush3.bf16.msra.mxu0 %v1152_v18  ;;  %v1186_v3 = vld [vmem:[%s1511_s1 + $0x1a0] sm:$0xff]   ;;  %v1190_v7 = vld [vmem:[%s1511_s1 + $0x1a8] sm:$0xff]   ;;  %v1193_v13 = vld [vmem:[%s1511_s1 + $0x130] sm:$0xff]  }
  0x23   :  { %1046 = vmatpush3.bf16.msra.mxu1 %v1153_v19  ;;  %1025 = vmatprep.subr.bf16.mxu0 %v1154_v20  ;;  %v44_v10 = vld [vmem:[%s1510_s0 + $0x8] sm:$0xff]  ;;  %v1194_v14 = vld [vmem:[%s1511_s1 + $0x1b0] sm:$0xff]   ;;  %v1195_v17 = vld [vmem:[%s1511_s1 + $0x178] sm:$0xff]  }
  0x24   :  { %1047 = vmatprep.subr.bf16.mxu1 %v1155_v21  ;;  %v71_v11 = vrot.slane %v44_v10, %v1383_v41  ;;  %v64_v12 = vcombine.high %v44_v10, %v44_v10  ;;  %v1196_v18 = vld [vmem:[%s1511_s1 + $0x1f8] sm:$0xff]   ;;  %v1201_v28 = vld [vmem:[%s1513_s3 + $0x8] sm:$0xff]   ;;  %v941_v34 = vld [vmem:[%s1512_s2] ss:$0 sm:$0xff] }
  0x25   :  { %v1197_v21 = vld [vmem:[%s1511_s1 + $0x138] sm:$0xff]  }
  0x26   :  { %1026 = vmatpush3.bf16.msra.mxu0 %v1156_v22  ;;  %v79_v15 = vcombine.high %v71_v11, %v71_v11  ;;  %v78_v16 = vrot.slane %v64_v12, %v1383_v41  ;;  %v1198_v22 = vld [vmem:[%s1511_s1 + $0x1b8] sm:$0xff]  }
  0x27   :  { %1048 = vmatpush3.bf16.msra.mxu1 %v1157_v23  ;;  %1027 = vmatprep.subr.bf16.mxu0 %v1158_v24  ;;  %v93_v24 = vpack.c.bf16 %v71_v11, %v71_v11 }
  0x28   :  { %1049 = vmatprep.subr.bf16.mxu1 %v1159_v25  ;;  %v94_v19 = vpack.c.bf16 %v79_v15, %v79_v15  ;;  %v80_v20 = vcombine.high %v78_v16, %v78_v16  ;;  %v95_v25 = vpack.c.bf16 %v78_v16, %v78_v16 }
  0x2a   :  { %1028 = vmatpush3.bf16.msra.mxu0 %v1160_v26  ;;  %v96_v23 = vpack.c.bf16 %v80_v20, %v80_v20  ;;  %v1200_v26 = vld [vmem:[%s1513_s3] sm:$0xff]   ;;  %v928_v20 = vstv %s1014_s15 }
  0x2b   :  { %1050 = vmatpush3.bf16.msra.mxu1 %v1161_v27  ;;  %1029 = vmatprep.subr.bf16.mxu0 %v1162_v29  ;;  %v1224_v27 = vmov 0.0   ;;  %v1202_v29 = vld [vmem:[%s1513_s3 + $0x10] sm:$0xff]  }
  0x2c   :  { %1051 = vmatprep.subr.bf16.mxu1 %v1163_v30  ;;  %v1203_v30 = vld [vmem:[%s1513_s3 + $0x18] sm:$0xff]  }
  0x2e   :  { %1030 = vmatpush3.bf16.msra.mxu0 %v1164_v31 }
  0x2f   :  { %1052 = vmatpush3.bf16.msra.mxu1 %v1165_v32  ;;  %1059 = vmatprep.subr.bf16.mxu0 %v1167_v35 }
  0x30   :  { %1081 = vmatprep.subr.bf16.mxu1 %v1168_v38 }
  0x31   :  { %649 = vmatmul.mubr.bf16.vlgmr.msra.gmra.mrb[0].mxu0 %v89_v47 }
  0x32   :  { %689 = vmatmul.mubr.bf16.vlgmr.msra.gmra.mrb[0].mxu1 %v91_v48  ;;  %1060 = vmatpush3.bf16.msra.mxu0 %v1169_v46 }
  0x33   :  { %1082 = vmatpush3.bf16.msra.mxu1 %v1170_v49  ;;  %1061 = vmatprep.subr.bf16.mxu0 %v1171_v52 }
  0x34   :  { %1083 = vmatprep.subr.bf16.mxu1 %v1172_v53  ;;  %728 = vmatprep.mubr.bf16.mxu0 %v94_v19 }
  0x35   :  { %768 = vmatprep.mubr.bf16.mxu1 %v96_v23 }
  0x36   :  { %1062 = vmatpush3.bf16.msra.mxu0 %v1173_v54 }
  0x37   :  { %1084 = vmatpush3.bf16.msra.mxu1 %v1174_v55  ;;  %1063 = vmatprep.subr.bf16.mxu0 %v1175_v56 }
  0x38   :  { %1085 = vmatprep.subr.bf16.mxu1 %v1176_v57 }
  0x3a   :  { %1064 = vmatpush3.bf16.msra.mxu0 %v1177_v58 }
  0x3b   :  { %1086 = vmatpush3.bf16.msra.mxu1 %v1178_v59  ;;  %1065 = vmatprep.subr.bf16.mxu0 %v1179_v60  ;;  %v864_v59 = vld [vmem:[%s1516_s6] sm:$0xff]  ;;  %v1226_v60 = vmov 0   ;;  %s917_s6 = sld [smem:[#allocation2]] }
  0x3c   :  { %1087 = vmatprep.subr.bf16.mxu1 %v1180_v61  ;;  %1133 = vset.pattern.permute.xlu0 %v1226_v60  ;;  %v1006_v61 = vld [vmem:[%s1514_s4] ss:$0 sm:$0xff]  ;;  %s1013_s4 = sld [smem:[#allocation2 + $0x1]] }
  0x3d   :  { %867 = vperm.xlu0 %1133, %v864_v59  }
  0x3e   :  { %1066 = vmatpush3.bf16.msra.mxu0 %v1181_v62 }
  0x3f   :  { %1088 = vmatpush3.bf16.msra.mxu1 %v1182_v63  ;;  %1067 = vmatprep.subr.bf16.mxu0 %v1183_v0 }
  0x40   :  { %1089 = vmatprep.subr.bf16.mxu1 %v1184_v1 }
  0x42   :  { %1068 = vmatpush3.bf16.msra.mxu0 %v1185_v2 }
  0x43   :  { %1090 = vmatpush3.bf16.msra.mxu1 %v1186_v3  ;;  %1069 = vmatprep.subr.bf16.mxu0 %v1187_v4 }
  0x44   :  { %1091 = vmatprep.subr.bf16.mxu1 %v1188_v5 }
  0x46   :  { %1070 = vmatpush3.bf16.msra.mxu0 %v1189_v6  ;;  %v863_v6 = vld [vmem:[%s1515_s5] sm:$0xf] }
  0x47   :  { %1092 = vmatpush3.bf16.msra.mxu1 %v1190_v7  ;;  %1071 = vmatprep.subr.bf16.mxu0 %v1191_v8 }
  0x48   :  { %1093 = vmatprep.subr.bf16.mxu1 %v1192_v9  ;;  %v920_v9 = vstv %s917_s6 }
  0x4a   :  { %1072 = vmatpush3.bf16.msra.mxu0 %v1193_v13 }
  0x4b   :  { %1094 = vmatpush3.bf16.msra.mxu1 %v1194_v14  ;;  %1073 = vmatprep.subr.bf16.mxu0 %v1195_v17 }
  0x4c   :  { %1095 = vmatprep.subr.bf16.mxu1 %v1196_v18  ;;  %v925_v18 = vstv %s1013_s4 }
  0x4e   :  { %1074 = vmatpush3.bf16.msra.mxu0 %v1197_v21 }
  0x4f   :  { %1096 = vmatpush3.bf16.msra.mxu1 %v1198_v22  ;;  %1110 = vmatprep.subr.bf16.mxu0 %v1224_v27 }
  0x50   :  { %1122 = vmatprep.subr.bf16.mxu1 %v1224_v27 }
  0x51   :  { %729 = vmatmul.mubr.bf16.vlgmr.msra.gmra.mrb[4].mxu0 %v93_v24 }
  0x52   :  { %769 = vmatmul.mubr.bf16.vlgmr.msra.gmra.mrb[4].mxu1 %v95_v25  ;;  %1111 = vmatpush3.bf16.msra.mxu0 %v1200_v26 }
  0x53   :  { %1112 = vmatprep.subr.bf16.mxu0 %v1224_v27  ;;  %1118 = vmatprep.mubr.msk.bf16.mxu0 %vm1225_vm0, %v1224_v27 }
  0x54   :  { %1124 = vmatprep.mubr.msk.bf16.mxu1 %vm1225_vm0, %v1224_v27 }
  0x56   :  { %1113 = vmatpush3.bf16.msra.mxu0 %v1201_v28 }
  0x57   :  { %1114 = vmatprep.subr.bf16.mxu0 %v1224_v27 }
  0x5a   :  { %1115 = vmatpush3.bf16.msra.mxu0 %v1202_v29 }
  0x5b   :  { %1116 = vmatprep.subr.bf16.mxu0 %v1224_v27 }
  0x5e   :  { %1117 = vmatpush3.bf16.msra.mxu0 %v1203_v30 }
  0xbc   :  { %v868_v7 = vpop.permute.xlu0 %867 }
 0x104   :  { %v1031_v31 = vpop.f32.mrb[0].mxu0 }
 0x105   :  { %v1053_v32 = vpop.f32.mrb[0].mxu1  ;;  %v1032_v35 = vpop.f32.mrb[1].mxu0 }
 0x106   :  { %v1054_v36 = vpop.f32.mrb[1].mxu1  ;;  %v1033_v37 = vadd.f32 %v1032_v35, %v1031_v31  ;;  %v1034_v39 = vpop.f32.mrb[2].mxu0 }
 0x107   :  { %v1055_v38 = vadd.f32 %v1054_v36, %v1053_v32  ;;  %v1056_v40 = vpop.f32.mrb[2].mxu1  ;;  %v1035_v41 = vpop.f32.mrb[3].mxu0 }
 0x108   :  { %v1057_v42 = vpop.f32.mrb[3].mxu1  ;;  %v651_v43 = vadd.f32 %v1033_v37, %v941_v34 }
 0x10a   :  { %v691_v44 = vadd.f32 %v1055_v38, %v651_v43 }
 0x124   :  { %v1075_v45 = vpop.f32.mrb[4].mxu0 }
 0x125   :  { %v1097_v46 = vpop.f32.mrb[4].mxu1  ;;  %v1076_v47 = vpop.f32.mrb[5].mxu0 }
 0x126   :  { %v1098_v48 = vpop.f32.mrb[5].mxu1  ;;  %v1077_v49 = vadd.f32 %v1076_v47, %v1075_v45  ;;  %v1078_v51 = vpop.f32.mrb[6].mxu0 }
 0x127   :  { %v1099_v50 = vadd.f32 %v1098_v48, %v1097_v46  ;;  %v1100_v52 = vpop.f32.mrb[6].mxu1  ;;  %v1079_v53 = vpop.f32.mrb[7].mxu0 }
 0x128   :  { %v1101_v54 = vpop.f32.mrb[7].mxu1  ;;  %v731_v55 = vadd.f32 %v1077_v49, %v691_v44 }
 0x12a   :  { %v771_v56 = vadd.f32 %v1099_v50, %v731_v55 }
 0x12c   :  { %v776_v57 = vmax.f32 %v771_v56, 0.0 }
 0x12e   :  { %v777_v58 = vpack.c.bf16 %v776_v57, %v776_v57 }
 0x130   :  { %1119 = vmatmul.mubr.msk.bf16.vlgmr.msra.gmra.mrb[8].mxu0 %vm817_vm1, %v777_v58 }
 0x203   :  { %v855_v62 = vpop.f32.mrb[8].mxu0 }
 0x204   :  { %v856_v63 = vadd.f32 %v1006_v61, %v855_v62  ;;  %v1120_v0 = vpop.f32.mrb[9].mxu0 }
 0x205   :  { %v858_v1 = vpop.f32.mrb[10].mxu0 }
 0x206   :  { %v861_v2 = vmax.f32 %v856_v63, 0.0  ;;  %v1121_v3 = vpop.f32.mrb[11].mxu0 }
 0x208   :  { %v862_v4 = vpack.c.bf16 %v861_v2, %v861_v2 }
 0x20a   :  { %v875_v5 = vsel %vm870_vm2, %v862_v4, 0 }
 0x20b   :  { %1123 = vmatpush3.bf16.xpose.msra.mxu1 %v875_v5 }
 0x212   :  { %1125 = vmatmul.mubr.msk.bf16.vlgmr.msra.gmra.mrb[8].mxu1 %vm870_vm2, %v863_v6 }
 0x2e5   :  { %v911_v8 = vpop.f32.mrb[8].mxu1 }
 0x2e6   :  { %v912_v10 = vadd.f32 %v911_v8, %v868_v7  ;;  %v1126_v11 = vpop.f32.mrb[9].mxu1 }
 0x2e7   :  { %v914_v12 = vpop.f32.mrb[10].mxu1 }
 0x2e8   :  { %v921_v13 = vsub.f32 %v920_v9, %v912_v10  ;;  %v1127_v14 = vpop.f32.mrb[11].mxu1 }
 0x2ea   :  { %v922_v15 = vmul.f32 1.442695, %v921_v13 }
 0x2ec   :  { %1204 = vpow2.f32 %v922_v15 }
 0x2f6   :  { %v1205_v16 = vpop.eup %1204 }
 0x2f7   :  { %v924_v17 = vadd.f32 1.0, %v1205_v16 }
 0x2f9   :  { %1206 = vrcp.f32 %v924_v17 }
 0x303   :  { %v1207_v19 = vpop.eup %1206 }
 0x304   :  { %v927_v21 = vmul.f32 %v1207_v19, %v925_v18 }
 0x306   :  { %v929_v22 = vadd.f32 %v928_v20, %v927_v21 }
 0x308   :  { %v933_v23 = vsel %vm932_vm3, %v929_v22, %v912_v10 }
 0x309   :  { %935 = vst.msk [vmem:[%s1518_s8] sm:$0xff] %vm934_vm4, %v933_v23 }
 0x30a   :  { %940 = vsyncpa [#allocation3], 1 }

</bundles_post_ra>
